<compile_context>
chip_gen: v7x
topology: tpu7x:2x2x1
jax: 0.10.0
libtpu: 0.0.40
codegen_flags: <defaults>
</compile_context>

<pallas_src>
import math

import jax
import jax.numpy as jnp
import numpy as np
from jax.experimental import pallas as pl
from jax.experimental.pallas import tpu as pltpu

_NEG = -1.0e30  # finite "-inf": avoids NaN from (-inf) - (-inf) on fully-masked tiles


def _cdiv(a, b):
    return (a + b - 1) // b


def _round_up(v, m):
    return _cdiv(v, m) * m


def _auto_tile_n(n_per_core, input_dim, L):
    """Largest instance tile whose streamed state stays well under VMEM.

    Budget ~28 MiB (safe under v7x's 64 MiB physical VMEM) for the f32 x
    double-buffer plus ~4 L-wide f32 intermediates per row, after reserving
    room for the resident (double-buffered) bf16 w1.
    """
    budget = 28 * 1024 * 1024
    budget -= 2 * input_dim * L * 2          # resident bf16 w1, 2 pipeline buffers
    budget = max(budget, 4 * 1024 * 1024)
    per_row = 2 * input_dim * 4 + 4 * L * 4  # x f32 double-buffer + f32 temps
    t = budget // per_row
    t = min(t, 2048, _round_up(max(n_per_core, 1), 16))
    return int(max(16, (t // 16) * 16))


def _make_kernel(n_valid, tile_n, tiles_per_core):
    def kernel(x_ref, w1_ref, b1_ref, wa1_ref, ba1_ref, wa2_ref, ba2_ref,
               m_ref, l_ref, acc_ref):
        c = pl.program_id(0)   # TensorCore slot ("parallel" axis)
        i = pl.program_id(1)   # instance-tile index within this core ("arbitrary")

        # Per-core running (m, l, acc): resident in the per-core output blocks.
        @pl.when(i == 0)
        def _init():
            m_ref[...] = jnp.full(m_ref.shape, _NEG, dtype=m_ref.dtype)
            l_ref[...] = jnp.zeros(l_ref.shape, dtype=l_ref.dtype)
            acc_ref[...] = jnp.zeros(acc_ref.shape, dtype=acc_ref.dtype)

        base = (c * tiles_per_core + i) * tile_n

        # Rows beyond the true bag size come from the unpadded tail block: zero
        # them so out-of-bounds garbage can never inject NaN/Inf into the matmuls.
        row = base + jax.lax.broadcasted_iota(jnp.int32, (tile_n, 1), 0)
        xb = x_ref[...].astype(jnp.bfloat16)
        xb = jnp.where(row < n_valid, xb, jnp.zeros_like(xb))

        # ---- feature extractor: Linear -> ReLU (Dropout == identity at inference)
        feat = jnp.dot(xb, w1_ref[...], preferred_element_type=jnp.float32)
        feat = jnp.maximum(feat + b1_ref[...], 0.0)              # (tile_n, L) f32
        feat_b = feat.astype(jnp.bfloat16)

        # ---- attention hidden layer: Linear -> tanh
        h = jnp.dot(feat_b, wa1_ref[...], preferred_element_type=jnp.float32)
        h = jnp.tanh(h + ba1_ref[...])                           # (tile_n, D) f32

        # ---- width-1 attention head, produced lane-dense as (1, tile_n) by
        #      fusing the transpose into the MXU dot (dot(q, k.T)-style).
        scores = jnp.dot(wa2_ref[...], h.astype(jnp.bfloat16).T,
                         preferred_element_type=jnp.float32) + ba2_ref[...]
        col = base + jax.lax.broadcasted_iota(jnp.int32, (1, tile_n), 1)
        scores = jnp.where(col < n_valid, scores, _NEG)          # (1, tile_n)

        # ---- online softmax over instances; pooled update on the MXU
        m_old = m_ref[...]                                       # (1, 1)
        m_new = jnp.maximum(m_old, jnp.max(scores, axis=-1, keepdims=True))
        alpha = jnp.exp(m_old - m_new)                           # (1, 1)
        e = jnp.exp(scores - m_new)                              # (1, tile_n); masked -> 0
        l_ref[...] = alpha * l_ref[...] + jnp.sum(e, axis=-1, keepdims=True)
        acc_ref[...] = alpha * acc_ref[...] + jnp.dot(
            e.astype(jnp.bfloat16), feat_b, preferred_element_type=jnp.float32)
        m_ref[...] = m_new

    return kernel


def dattention_forward(x, params, *, tile_n=None, num_cores=2):
    """Forward pass of DAttention. Returns (logits, Y_hat, Y_prob, results_dict).

    num_cores: size of the leading "parallel" grid axis.  Set it to the number
    of TensorCores (2 on v7x) to split the instance reduction across cores; on
    single-core chips (v5e/v6e) the extra axis runs serially and is harmless.
    Assumes N >= 1 (a bag has at least one instance).
    """
    N, input_dim = x.shape
    L = params["w1"].shape[1]
    D = params["wa1"].shape[1]
    num_cores = max(1, int(num_cores))

    if tile_n is None:
        tile_n = _auto_tile_n(_cdiv(N, num_cores), input_dim, L)
    tile_n = max(16, _round_up(int(tile_n), 16))

    tiles_total = _cdiv(N, tile_n)
    num_cores = max(1, min(num_cores, tiles_total))   # don't schedule empty cores
    tiles_per_core = _cdiv(tiles_total, num_cores)
    last_blk = tiles_total - 1

    # Weights are tiny relative to x: cast the MXU operands to bf16 once here.
    w1_b = params["w1"].astype(jnp.bfloat16)                      # (input_dim, L)
    wa1_b = params["wa1"].astype(jnp.bfloat16)                    # (L, D)
    wa2_row = params["wa2"].reshape(1, D).astype(jnp.bfloat16)    # (1, D)

    kernel = _make_kernel(n_valid=N, tile_n=tile_n, tiles_per_core=tiles_per_core)

    def x_map(c, i):
        # Clamp so a fully-padded tail tile re-reads the last valid block; its
        # rows are masked out inside the kernel so it contributes nothing.
        return (jnp.minimum(c * tiles_per_core + i, last_blk), 0)

    const_map = lambda c, i: (0, 0)
    out_map = lambda c, i: (c, 0, 0)

    m_parts, l_parts, acc_parts = pl.pallas_call(
        kernel,
        out_shape=(
            jax.ShapeDtypeStruct((num_cores, 1, 1), jnp.float32),   # running max m
            jax.ShapeDtypeStruct((num_cores, 1, 1), jnp.float32),   # running denom l
            jax.ShapeDtypeStruct((num_cores, 1, L), jnp.float32),   # unnormalized pooled
        ),
        grid=(num_cores, tiles_per_core),
        in_specs=[
            # x: streamed straight from HBM as f32 (no wrapper pad/cast copy),
            # double-buffered by the default pipeline.
            pl.BlockSpec((tile_n, input_dim), x_map),
            # resident weights / biases (same block every step -> DMA'd once).
            pl.BlockSpec((input_dim, L), const_map),
            pl.BlockSpec((1, L), const_map),
            pl.BlockSpec((L, D), const_map),
            pl.BlockSpec((1, D), const_map),
            pl.BlockSpec((1, D), const_map),
            pl.BlockSpec((1, 1), const_map),
        ],
        out_specs=(
            pl.BlockSpec((None, 1, 1), out_map),
            pl.BlockSpec((None, 1, 1), out_map),
            pl.BlockSpec((None, 1, L), out_map),
        ),
        compiler_params=pltpu.CompilerParams(
            dimension_semantics=("parallel", "arbitrary"),
            vmem_limit_bytes=48 * 1024 * 1024,   # safe on v7x (64 MiB) and v5e/v6e
        ),
    )(x, w1_b, params["b1"], wa1_b, params["ba1"], wa2_row, params["ba2"])

    # Merge the per-core online-softmax partials (exact log-sum-exp combine).
    # Empty cores carry m = -1e30 so their weight underflows to exactly 0.
    m_parts = m_parts.reshape(num_cores, 1)
    l_parts = l_parts.reshape(num_cores, 1)
    acc_parts = acc_parts.reshape(num_cores, L)
    m_glob = jnp.max(m_parts, axis=0, keepdims=True)               # (1, 1)
    w = jnp.exp(m_parts - m_glob)                                  # (C, 1)
    denom = jnp.sum(w * l_parts)
    M = jnp.sum(w * acc_parts, axis=0, keepdims=True) / denom      # (1, L)

    # Tiny classifier epilogue stays in the wrapper but fuses into the same jit.
    logits = jnp.dot(M, params["wc"]) + params["bc"]               # (1, n_classes)
    y_hat = jnp.argmax(logits)                                     # torch.argmax (flattened)
    y_prob = jax.nn.softmax(logits, axis=-1)
    return logits, y_hat, y_prob, {}


def dattention_reference(x, params):
    """Pure-JAX reference sharing the kernel's bf16 casts on the big matmuls."""
    xb = x.astype(jnp.bfloat16)
    w1 = params["w1"].astype(jnp.bfloat16)
    feat = jnp.maximum(
        jnp.dot(xb, w1, preferred_element_type=jnp.float32) + params["b1"], 0.0)
    h = jnp.tanh(
        jnp.dot(feat.astype(jnp.bfloat16), params["wa1"].astype(jnp.bfloat16),
                preferred_element_type=jnp.float32) + params["ba1"])
    scores = jnp.dot(h.astype(jnp.bfloat16), params["wa2"].astype(jnp.bfloat16),
                     preferred_element_type=jnp.float32) + params["ba2"]     # (N, 1)
    a = jax.nn.softmax(scores, axis=0)                                       # over instances
    M = jnp.sum(a * feat, axis=0, keepdims=True)                             # (1, L)
    logits = jnp.dot(M, params["wc"]) + params["bc"]
    return logits, jnp.argmax(logits), jax.nn.softmax(logits, axis=-1)


def xavier_normal(key, fan_in, fan_out):
    std = math.sqrt(2.0 / (fan_in + fan_out))
    return std * jax.random.normal(key, (fan_in, fan_out), dtype=jnp.float32)


def init_params(key, input_dim, L=512, D=128, n_classes=2):
    ks = jax.random.split(key, 4)
    return {
        # feature: Linear(input_dim, L), xavier_normal weights, zero bias
        "w1": xavier_normal(ks[0], input_dim, L), "b1": jnp.zeros((1, L), jnp.float32),
        # attention: Linear(L, D) -> tanh -> Linear(D, 1)
        "wa1": xavier_normal(ks[1], L, D), "ba1": jnp.zeros((1, D), jnp.float32),
        "wa2": xavier_normal(ks[2], D, 1), "ba2": jnp.zeros((1, 1), jnp.float32),
        # classifier: Linear(L * K, n_classes)  (K == 1)
        "wc": xavier_normal(ks[3], L, n_classes), "bc": jnp.zeros((1, n_classes), jnp.float32),
    }


if __name__ == "__main__":
    key = jax.random.PRNGKey(0)
    k_x, k_p = jax.random.split(key)

    # Small shapes: a bag of N=40 instances, input_dim=64, n_classes=2.
    # tile_n=16, num_cores=2 -> grid (2, 2): exercises the per-core split, the
    # partial-tile row masking, a fully-masked tail tile and the LSE combine.
    N, input_dim, n_classes = 40, 64, 2
    x = jax.random.normal(k_x, (N, input_dim), dtype=jnp.float32)
    params = init_params(k_p, input_dim, L=512, D=128, n_classes=n_classes)

    fwd = jax.jit(dattention_forward, static_argnames=("tile_n", "num_cores"))
    logits, y_hat, y_prob, _ = fwd(x, params, tile_n=16, num_cores=2)
    jax.block_until_ready((logits, y_hat, y_prob))

    # Correctness check against a pure-JAX reference.
    ref_logits, _, ref_prob = dattention_reference(x, params)
    np.testing.assert_allclose(np.asarray(logits), np.asarray(ref_logits),
                               rtol=2e-2, atol=2e-2)
    np.testing.assert_allclose(np.asarray(y_prob), np.asarray(ref_prob),
                               rtol=2e-2, atol=2e-2)
    print("KERNEL_OK")
</pallas_src>

<mosaic_0001>
module attributes {stable_mosaic.version = 11 : i64} {
  func.func @kernel(%arg0: i32, %arg1: i32, %arg2: memref<16x64xf32, #tpu.memory_space<vmem>>, %arg3: memref<64x512xbf16, #tpu.memory_space<vmem>>, %arg4: memref<1x512xf32, #tpu.memory_space<vmem>>, %arg5: memref<512x128xbf16, #tpu.memory_space<vmem>>, %arg6: memref<1x128xf32, #tpu.memory_space<vmem>>, %arg7: memref<1x128xbf16, #tpu.memory_space<vmem>>, %arg8: memref<1x1xf32, #tpu.memory_space<vmem>>, %arg9: memref<1x1x1xf32, #tpu.memory_space<vmem>>, %arg10: memref<1x1x1xf32, #tpu.memory_space<vmem>>, %arg11: memref<1x1x512xf32, #tpu.memory_space<vmem>>) attributes {dimension_semantics = [#tpu.dimension_semantics<parallel>, #tpu.dimension_semantics<arbitrary>], iteration_bounds = array<i64: 2, 2>, scalar_prefetch = 0 : i64, scratch_operands = 0 : i64, tpu.core_type = #tpu.core_type<tc>, window_params = [{transform_indices = @transform_0, window_bounds = array<i64: 16, 64>}, {pipeline_mode = #tpu.pipeline_mode<synchronous>, transform_indices = @transform_1, window_bounds = array<i64: 64, 512>}, {pipeline_mode = #tpu.pipeline_mode<synchronous>, transform_indices = @transform_2, window_bounds = array<i64: 1, 512>}, {pipeline_mode = #tpu.pipeline_mode<synchronous>, transform_indices = @transform_3, window_bounds = array<i64: 512, 128>}, {pipeline_mode = #tpu.pipeline_mode<synchronous>, transform_indices = @transform_4, window_bounds = array<i64: 1, 128>}, {pipeline_mode = #tpu.pipeline_mode<synchronous>, transform_indices = @transform_5, window_bounds = array<i64: 1, 128>}, {pipeline_mode = #tpu.pipeline_mode<synchronous>, transform_indices = @transform_6, window_bounds = array<i64: 1, 1>}, {transform_indices = @transform_7, window_bounds = array<i64: 1, 1, 1>}, {transform_indices = @transform_8, window_bounds = array<i64: 1, 1, 1>}, {transform_indices = @transform_9, window_bounds = array<i64: 1, 1, 512>}]} {
    %c0_i32 = arith.constant 0 : i32
    %0 = arith.cmpi eq, %arg1, %c0_i32 : i32
    %1 = arith.extui %0 : i1 to i32
    %c0_i32_0 = arith.constant 0 : i32
    %2 = arith.cmpi ne, %1, %c0_i32_0 : i32
    scf.if %2 {
      %cst_41 = arith.constant -1.000000e+30 : f32
      %77 = vector.broadcast %cst_41 : f32 to vector<1x1xf32>
      %c0_42 = arith.constant 0 : index
      %c0_43 = arith.constant 0 : index
      %c0_44 = arith.constant 0 : index
      %78 = vector.load %arg9[%c0_42, %c0_43, %c0_44] : memref<1x1x1xf32, #tpu.memory_space<vmem>>, vector<1x1x1xf32>
      %79 = vector.shape_cast %78 : vector<1x1x1xf32> to vector<1x1xf32>
      %80 = vector.shape_cast %77 : vector<1x1xf32> to vector<1x1x1xf32>
      tpu.vector_store %arg9[%c0_42, %c0_43, %c0_44], %80 {strides = array<i32>} : memref<1x1x1xf32, #tpu.memory_space<vmem>>, vector<1x1x1xf32>,
      %cst_45 = arith.constant 0.000000e+00 : f32
      %81 = vector.broadcast %cst_45 : f32 to vector<1x1xf32>
      %c0_46 = arith.constant 0 : index
      %c0_47 = arith.constant 0 : index
      %c0_48 = arith.constant 0 : index
      %82 = vector.load %arg10[%c0_46, %c0_47, %c0_48] : memref<1x1x1xf32, #tpu.memory_space<vmem>>, vector<1x1x1xf32>
      %83 = vector.shape_cast %82 : vector<1x1x1xf32> to vector<1x1xf32>
      %84 = vector.shape_cast %81 : vector<1x1xf32> to vector<1x1x1xf32>
      tpu.vector_store %arg10[%c0_46, %c0_47, %c0_48], %84 {strides = array<i32>} : memref<1x1x1xf32, #tpu.memory_space<vmem>>, vector<1x1x1xf32>,
      %cst_49 = arith.constant 0.000000e+00 : f32
      %85 = vector.broadcast %cst_49 : f32 to vector<1x512xf32>
      %c0_50 = arith.constant 0 : index
      %c0_51 = arith.constant 0 : index
      %c0_52 = arith.constant 0 : index
      %86 = vector.load %arg11[%c0_50, %c0_51, %c0_52] : memref<1x1x512xf32, #tpu.memory_space<vmem>>, vector<1x1x512xf32>
      %87 = vector.shape_cast %86 : vector<1x1x512xf32> to vector<1x512xf32>
      %88 = vector.shape_cast %85 : vector<1x512xf32> to vector<1x1x512xf32>
      tpu.vector_store %arg11[%c0_50, %c0_51, %c0_52], %88 {strides = array<i32>} : memref<1x1x512xf32, #tpu.memory_space<vmem>>, vector<1x1x512xf32>,
    } else {
    }
    %c2_i32 = arith.constant 2 : i32
    %3 = arith.muli %arg0, %c2_i32 : i32
    %4 = arith.addi %3, %arg1 : i32
    %c16_i32 = arith.constant 16 : i32
    %5 = arith.muli %4, %c16_i32 : i32
    %6 = tpu.iota {dimensions = array<i32: 0>} : vector<16x1xi32>
    %7 = vector.broadcast %5 : i32 to vector<16x1xi32>
    %8 = arith.addi %7, %6 : vector<16x1xi32>
    %c0 = arith.constant 0 : index
    %c0_1 = arith.constant 0 : index
    %9 = vector.load %arg2[%c0, %c0_1] : memref<16x64xf32, #tpu.memory_space<vmem>>, vector<16x64xf32>
    %10 = arith.truncf %9 : vector<16x64xf32> to vector<16x64xbf16>
    %c40_i32 = arith.constant 40 : i32
    %11 = vector.broadcast %c40_i32 : i32 to vector<16x1xi32>
    %12 = arith.cmpi slt, %8, %11 : vector<16x1xi32>
    %cst = arith.constant 0.000000e+00 : bf16
    %13 = vector.broadcast %cst : bf16 to vector<16x64xbf16>
    %14 = vector.shape_cast %12 : vector<16x1xi1> to vector<16x1xi1>
    %15 = vector.broadcast %14 : vector<16x1xi1> to vector<16x64xi1>
    %16 = arith.select %15, %10, %13 : vector<16x64xi1>, vector<16x64xbf16>
    %c0_2 = arith.constant 0 : index
    %c0_3 = arith.constant 0 : index
    %17 = vector.load %arg3[%c0_2, %c0_3] : memref<64x512xbf16, #tpu.memory_space<vmem>>, vector<64x512xbf16>
    %cst_4 = arith.constant dense<0.000000e+00> : vector<16x512xf32>
    %18 = tpu.matmul %16, %17, %cst_4 {dimension_numbers = #tpu.dot_dimension_numbers<[1], [0], [0], [1], [0, 0, 1, 1], [], []>} : vector<16x64xbf16>, vector<64x512xbf16>, vector<16x512xf32> -> vector<16x512xf32>
    %c0_5 = arith.constant 0 : index
    %c0_6 = arith.constant 0 : index
    %19 = vector.load %arg4[%c0_5, %c0_6] : memref<1x512xf32, #tpu.memory_space<vmem>>, vector<1x512xf32>
    %20 = vector.broadcast %19 : vector<1x512xf32> to vector<16x512xf32>
    %21 = arith.addf %18, %20 : vector<16x512xf32>
    %cst_7 = arith.constant 0.000000e+00 : f32
    %22 = vector.broadcast %cst_7 : f32 to vector<16x512xf32>
    %23 = arith.maximumf %21, %22 : vector<16x512xf32>
    %24 = arith.truncf %23 : vector<16x512xf32> to vector<16x512xbf16>
    %c0_8 = arith.constant 0 : index
    %c0_9 = arith.constant 0 : index
    %25 = vector.load %arg5[%c0_8, %c0_9] : memref<512x128xbf16, #tpu.memory_space<vmem>>, vector<512x128xbf16>
    %cst_10 = arith.constant dense<0.000000e+00> : vector<16x128xf32>
    %26 = tpu.matmul %24, %25, %cst_10 {dimension_numbers = #tpu.dot_dimension_numbers<[1], [0], [0], [1], [0, 0, 1, 1], [], []>} : vector<16x512xbf16>, vector<512x128xbf16>, vector<16x128xf32> -> vector<16x128xf32>
    %c0_11 = arith.constant 0 : index
    %c0_12 = arith.constant 0 : index
    %27 = vector.load %arg6[%c0_11, %c0_12] : memref<1x128xf32, #tpu.memory_space<vmem>>, vector<1x128xf32>
    %28 = vector.broadcast %27 : vector<1x128xf32> to vector<16x128xf32>
    %29 = arith.addf %26, %28 : vector<16x128xf32>
    %30 = math.tanh %29 : vector<16x128xf32>
    %c0_13 = arith.constant 0 : index
    %c0_14 = arith.constant 0 : index
    %31 = vector.load %arg7[%c0_13, %c0_14] : memref<1x128xbf16, #tpu.memory_space<vmem>>, vector<1x128xbf16>
    %32 = arith.truncf %30 : vector<16x128xf32> to vector<16x128xbf16>
    %33 = tpu.transpose %32, [1, 0] : vector<16x128xbf16> -> vector<128x16xbf16>
    %cst_15 = arith.constant dense<0.000000e+00> : vector<1x16xf32>
    %34 = tpu.matmul %31, %33, %cst_15 {dimension_numbers = #tpu.dot_dimension_numbers<[1], [0], [0], [1], [0, 0, 1, 1], [], []>} : vector<1x128xbf16>, vector<128x16xbf16>, vector<1x16xf32> -> vector<1x16xf32>
    %c0_16 = arith.constant 0 : index
    %c0_17 = arith.constant 0 : index
    %35 = vector.load %arg8[%c0_16, %c0_17] : memref<1x1xf32, #tpu.memory_space<vmem>>, vector<1x1xf32>
    %36 = vector.broadcast %35 : vector<1x1xf32> to vector<1x16xf32>
    %37 = arith.addf %34, %36 : vector<1x16xf32>
    %38 = tpu.iota {dimensions = array<i32: 1>} : vector<1x16xi32>
    %39 = vector.broadcast %5 : i32 to vector<1x16xi32>
    %40 = arith.addi %39, %38 : vector<1x16xi32>
    %c40_i32_18 = arith.constant 40 : i32
    %41 = vector.broadcast %c40_i32_18 : i32 to vector<1x16xi32>
    %42 = arith.cmpi slt, %40, %41 : vector<1x16xi32>
    %cst_19 = arith.constant -1.000000e+30 : f32
    %43 = vector.broadcast %cst_19 : f32 to vector<1x16xf32>
    %44 = arith.select %42, %37, %43 : vector<1x16xi1>, vector<1x16xf32>
    %c0_20 = arith.constant 0 : index
    %c0_21 = arith.constant 0 : index
    %c0_22 = arith.constant 0 : index
    %45 = vector.load %arg9[%c0_20, %c0_21, %c0_22] : memref<1x1x1xf32, #tpu.memory_space<vmem>>, vector<1x1x1xf32>
    %46 = vector.shape_cast %45 : vector<1x1x1xf32> to vector<1x1xf32>
    %cst_23 = arith.constant dense<0xFF800000> : vector<1xf32>
    %47 = vector.multi_reduction <maximumf>, %44, %cst_23 [1] : vector<1x16xf32> to vector<1xf32>
    %48 = vector.shape_cast %47 : vector<1xf32> to vector<1x1xf32>
    %49 = arith.maximumf %46, %48 : vector<1x1xf32>
    %50 = arith.subf %46, %49 : vector<1x1xf32>
    %51 = math.exp %50 : vector<1x1xf32>
    %52 = vector.broadcast %49 : vector<1x1xf32> to vector<1x16xf32>
    %53 = arith.subf %44, %52 : vector<1x16xf32>
    %54 = math.exp %53 : vector<1x16xf32>
    %c0_24 = arith.constant 0 : index
    %c0_25 = arith.constant 0 : index
    %c0_26 = arith.constant 0 : index
    %55 = vector.load %arg10[%c0_24, %c0_25, %c0_26] : memref<1x1x1xf32, #tpu.memory_space<vmem>>, vector<1x1x1xf32>
    %56 = vector.shape_cast %55 : vector<1x1x1xf32> to vector<1x1xf32>
    %57 = arith.mulf %51, %56 : vector<1x1xf32>
    %cst_27 = arith.constant dense<0.000000e+00> : vector<1xf32>
    %58 = vector.multi_reduction <add>, %54, %cst_27 [1] : vector<1x16xf32> to vector<1xf32>
    %59 = vector.shape_cast %58 : vector<1xf32> to vector<1x1xf32>
    %60 = arith.addf %57, %59 : vector<1x1xf32>
    %c0_28 = arith.constant 0 : index
    %c0_29 = arith.constant 0 : index
    %c0_30 = arith.constant 0 : index
    %61 = vector.load %arg10[%c0_28, %c0_29, %c0_30] : memref<1x1x1xf32, #tpu.memory_space<vmem>>, vector<1x1x1xf32>
    %62 = vector.shape_cast %61 : vector<1x1x1xf32> to vector<1x1xf32>
    %63 = vector.shape_cast %60 : vector<1x1xf32> to vector<1x1x1xf32>
    tpu.vector_store %arg10[%c0_28, %c0_29, %c0_30], %63 {strides = array<i32>} : memref<1x1x1xf32, #tpu.memory_space<vmem>>, vector<1x1x1xf32>,
    %c0_31 = arith.constant 0 : index
    %c0_32 = arith.constant 0 : index
    %c0_33 = arith.constant 0 : index
    %64 = vector.load %arg11[%c0_31, %c0_32, %c0_33] : memref<1x1x512xf32, #tpu.memory_space<vmem>>, vector<1x1x512xf32>
    %65 = vector.shape_cast %64 : vector<1x1x512xf32> to vector<1x512xf32>
    %66 = vector.broadcast %51 : vector<1x1xf32> to vector<1x512xf32>
    %67 = arith.mulf %66, %65 : vector<1x512xf32>
    %68 = arith.truncf %54 : vector<1x16xf32> to vector<1x16xbf16>
    %cst_34 = arith.constant dense<0.000000e+00> : vector<1x512xf32>
    %69 = tpu.matmul %68, %24, %cst_34 {dimension_numbers = #tpu.dot_dimension_numbers<[1], [0], [0], [1], [0, 0, 1, 1], [], []>} : vector<1x16xbf16>, vector<16x512xbf16>, vector<1x512xf32> -> vector<1x512xf32>
    %70 = arith.addf %67, %69 : vector<1x512xf32>
    %c0_35 = arith.constant 0 : index
    %c0_36 = arith.constant 0 : index
    %c0_37 = arith.constant 0 : index
    %71 = vector.load %arg11[%c0_35, %c0_36, %c0_37] : memref<1x1x512xf32, #tpu.memory_space<vmem>>, vector<1x1x512xf32>
    %72 = vector.shape_cast %71 : vector<1x1x512xf32> to vector<1x512xf32>
    %73 = vector.shape_cast %70 : vector<1x512xf32> to vector<1x1x512xf32>
    tpu.vector_store %arg11[%c0_35, %c0_36, %c0_37], %73 {strides = array<i32>} : memref<1x1x512xf32, #tpu.memory_space<vmem>>, vector<1x1x512xf32>,
    %c0_38 = arith.constant 0 : index
    %c0_39 = arith.constant 0 : index
    %c0_40 = arith.constant 0 : index
    %74 = vector.load %arg9[%c0_38, %c0_39, %c0_40] : memref<1x1x1xf32, #tpu.memory_space<vmem>>, vector<1x1x1xf32>
    %75 = vector.shape_cast %74 : vector<1x1x1xf32> to vector<1x1xf32>
    %76 = vector.shape_cast %49 : vector<1x1xf32> to vector<1x1x1xf32>
    tpu.vector_store %arg9[%c0_38, %c0_39, %c0_40], %76 {strides = array<i32>} : memref<1x1x1xf32, #tpu.memory_space<vmem>>, vector<1x1x1xf32>,
    return
  }
  func.func @transform_0(%arg0: i32, %arg1: i32) -> (i32, i32) {
    %c2_i32 = arith.constant 2 : i32
    %0 = arith.muli %arg0, %c2_i32 : i32
    %1 = arith.addi %0, %arg1 : i32
    %c2_i32_0 = arith.constant 2 : i32
    %2 = arith.minsi %1, %c2_i32_0 : i32
    %c0_i32 = arith.constant 0 : i32
    %c0_i32_1 = arith.constant 0 : i32
    return %2, %c0_i32 : i32, i32
  }
  func.func @transform_1(%arg0: i32, %arg1: i32) -> (i32, i32) {
    %c0_i32 = arith.constant 0 : i32
    %c0_i32_0 = arith.constant 0 : i32
    %c0_i32_1 = arith.constant 0 : i32
    return %c0_i32, %c0_i32_0 : i32, i32
  }
  func.func @transform_2(%arg0: i32, %arg1: i32) -> (i32, i32) {
    %c0_i32 = arith.constant 0 : i32
    %c0_i32_0 = arith.constant 0 : i32
    %c0_i32_1 = arith.constant 0 : i32
    return %c0_i32, %c0_i32_0 : i32, i32
  }
  func.func @transform_3(%arg0: i32, %arg1: i32) -> (i32, i32) {
    %c0_i32 = arith.constant 0 : i32
    %c0_i32_0 = arith.constant 0 : i32
    %c0_i32_1 = arith.constant 0 : i32
    return %c0_i32, %c0_i32_0 : i32, i32
  }
  func.func @transform_4(%arg0: i32, %arg1: i32) -> (i32, i32) {
    %c0_i32 = arith.constant 0 : i32
    %c0_i32_0 = arith.constant 0 : i32
    %c0_i32_1 = arith.constant 0 : i32
    return %c0_i32, %c0_i32_0 : i32, i32
  }
  func.func @transform_5(%arg0: i32, %arg1: i32) -> (i32, i32) {
    %c0_i32 = arith.constant 0 : i32
    %c0_i32_0 = arith.constant 0 : i32
    %c0_i32_1 = arith.constant 0 : i32
    return %c0_i32, %c0_i32_0 : i32, i32
  }
  func.func @transform_6(%arg0: i32, %arg1: i32) -> (i32, i32) {
    %c0_i32 = arith.constant 0 : i32
    %c0_i32_0 = arith.constant 0 : i32
    %c0_i32_1 = arith.constant 0 : i32
    return %c0_i32, %c0_i32_0 : i32, i32
  }
  func.func @transform_7(%arg0: i32, %arg1: i32) -> (i32, i32, i32) {
    %c0_i32 = arith.constant 0 : i32
    %c0_i32_0 = arith.constant 0 : i32
    %c0_i32_1 = arith.constant 0 : i32
    return %arg0, %c0_i32, %c0_i32_0 : i32, i32, i32
  }
  func.func @transform_8(%arg0: i32, %arg1: i32) -> (i32, i32, i32) {
    %c0_i32 = arith.constant 0 : i32
    %c0_i32_0 = arith.constant 0 : i32
    %c0_i32_1 = arith.constant 0 : i32
    return %arg0, %c0_i32, %c0_i32_0 : i32, i32, i32
  }
  func.func @transform_9(%arg0: i32, %arg1: i32) -> (i32, i32, i32) {
    %c0_i32 = arith.constant 0 : i32
    %c0_i32_0 = arith.constant 0 : i32
    %c0_i32_1 = arith.constant 0 : i32
    return %arg0, %c0_i32, %c0_i32_0 : i32, i32, i32
  }
}

</mosaic_0001>

<bundles_post_ra>
// kernel: dattention_forward.1
= control target key start
LH: loop header
LB: loop body
LE: loop exit
PB: predicated region body
PF: predicated region fallthrough
CT: control target
= control target key end

     0   :  { %s1688_s11 = smov 0   ;;  %s1690_s12 = smov 0   ;;  %s1961_s0 = inlined_call_operand.vmem [shape: f32[40,64], index: 0, kind: input, shape index: {}]   ;;  %s1962_s1 = inlined_call_operand.vmem [shape: bf16[64,512], index: 1, kind: input, shape index: {}]   ;;  %s1963_s2 = inlined_call_operand.vmem [shape: f32[1,512], index: 2, kind: input, shape index: {}]   ;;  %s1964_s3 = inlined_call_operand.vmem [shape: bf16[512,128], index: 3, kind: input, shape index: {}]   ;;  %s1965_s4 = inlined_call_operand.vmem [shape: f32[1,128], index: 4, kind: input, shape index: {}]   ;;  %s1966_s5 = inlined_call_operand.vmem [shape: bf16[1,128], index: 5, kind: input, shape index: {}]   ;;  %s1967_s6 = inlined_call_operand.<no memory space> [shape: f32[1,1], index: 6, kind: input, shape index: {}]   ;;  %s1968_s7 = inlined_call_operand.vmem [shape: f32[2,1,1], index: 7, kind: output, shape index: {0}]   ;;  %s1969_s8 = inlined_call_operand.vmem [shape: f32[2,1,1], index: 8, kind: output, shape index: {1}]   ;;  %s1970_s9 = inlined_call_operand.vmem [shape: f32[2,1,512], index: 9, kind: output, shape index: {2}]  }
   0x1   :  { %v15_v0 = vstv %s1967_s6  ;;  %s1692_s13 = smov 0   ;;  %s1694_s14 = smov 0  }
   0x2   :  { %16 = vst [vmem:[#allocation2] sm:$0x1] %v15_v0  ;;  %s1696_s15 = smov 0  }
   0x3 LB: > { %s31_s6 = sadd.s32 1, %s1619_s13  ;;  %s34_s16 = sadd.s32 1, %s1623_s14  ;;  %s1627_s15 = sphi %s1696_s15, %s22_s15   ;;  %s1623_s14 = sphi %s1694_s14, %s1976_s14   ;;  %s1619_s13 = sphi %s1692_s13, %s1975_s13   ;;  %s1615_s12 = sphi %s1690_s12, %s1974_s12   ;;  %s1611_s11 = sphi %s1688_s11, %s1973_s11  }
   0x4   : > { %p32_p0 = scmp.ge.s32.totalorder %s31_s6, 2  ;;  %p1361_p1 = scmp.ge.s32.totalorder %s1627_s15, 1 }
   0x5   : > { %p331_p2 = scmp.lt.s32.totalorder %s1627_s15, 5 }
   0x6   : > { %s1978_s6 = smov (%p32_p0, %s31_s6), 0  ;;  %s1980_s16 = smov (!%p32_p0, %s34_s16), %s1623_s14 }
   0x7   : > { %p332_p3 = pnand %p1361_p1, %p331_p2  ;;  %p36_p4 = scmp.ge.s32.totalorder %s1980_s16, 2 }
   0x8   : > { %s1362_s17 = sshll.u32 (!%p332_p3), %s1615_s12, 1  ;;  %p402_p5 = scmp.lt.s32.totalorder (!%p332_p3), %s1615_s12, 1 }
   0x9   : > { %s1982_s16 = smov (%p36_p4, %s1980_s16), 0  ;;  %335 = sbr.rel (%p332_p3) target bundleno = 1241 (0x4d9), region = 48 }
   0xa   : > { %1971 = sst [smem:[#allocation3_spill]] %s1982_s16  ;;  %s1721_s18 = sadd.s32 (!%p332_p3), %s1611_s11, %s1362_s17 }
   0xb   : > { %p382_p6 = scmp.lt.s32.totalorder (!%p332_p3), %s1721_s18, 2  ;;  %p1366_p8 = scmp.ne.s32.totalorder (!%p332_p3), %s1611_s11, 0 }
  0x10   : > { %s1984_s12 = smov (!%p402_p5, %s1615_s12), 1  ;;  %vm419_vm0 = vcmask (!%p1366_p8), 0   ;;  %v422_v1 = vlaneseq (!%p1366_p8)  ;;  %v1629_v2 = vmov (!%p1366_p8), -1e+30   ;;  %v1630_v3 = vmov (!%p1366_p8), 0.0  }
  0x11   : > { %s383_s19 = scalar_select %p382_p6, %s1721_s18, 2 }
  0x12   : > { %s1728_s22 = scalar_lea.vmem %s1968_s7, %s1984_s12  ;;  %s1733_s25 = scalar_lea.vmem %s1969_s8, %s1984_s12  ;;  %vm424_vm1 = vcmp.lt.s32.totalorder (!%p1366_p8), %v422_v1, 512 }
  0x13   : > { %s1363_s26 = sshll.u32 %s383_s19, 1  ;;  %s1365_s27 = sshll.u32 %s1984_s12, 2  ;;  %420 = vst.msk [vmem:[%s1728_s22] sm:$0x1] (!%p1366_p8), %vm419_vm0, %v1629_v2  ;;  %421 = vst.msk [vmem:[%s1733_s25] sm:$0x1] (!%p1366_p8), %vm419_vm0, %v1630_v3 }
  0x14   : > { %p389_p7 = scmp.lt.s32.totalorder %s1363_s26, 4  ;;  %s1738_s30 = scalar_lea.vmem %s1970_s9, %s1365_s27 }
  0x15   : > { %418 = sbr.rel (%p1366_p8) target bundleno = 28 (0x1c), region = 52  ;;  %426 = vst.msk [vmem:[%s1738_s30] sm:$0xf] (!%p1366_p8), %vm424_vm1, %v1630_v3 }
  0x16   : > { %s1986_s26 = smov (!%p389_p7, %s1363_s26), 4 }
  0x17   : > { %s1364_s10 = sshll.u32 %s1986_s26, 3 }
  0x18   : > { %s1743_s20 = scalar_lea.vmem %s1961_s0, %s1364_s10 }
  0x1c PF: > { %v1525_v4 = vld [vmem:[%s1962_s1 + $0x4] ss:$16 sps:$4 sm:$0xff]   ;;  %s1368_s16 = sshll.u32 %s1721_s18, 4  ;;  %v430_v5 = vlaneseq  ;;  %v1527_v6 = vld [vmem:[%s1962_s1 + $0xc] ss:$16 sps:$4 sm:$0xff]   ;;  %v1631_v7 = vmov 0  }
  0x1d   : > { %608 = vmatprep.mubr.bf16.mxu0 %v1631_v7  ;;  %651 = vmatprep.mubr.bf16.mxu1 %v1631_v7  ;;  %v1758_v8 = vstv %s1368_s16  ;;  %v1529_v9 = vld [vmem:[%s1962_s1] ss:$16 sps:$4 sm:$0xff]   ;;  %v1530_v10 = vld [vmem:[%s1962_s1 + $0x8] ss:$16 sps:$4 sm:$0xff]   ;;  %v1531_v12 = vld [vmem:[%s1962_s1 + $0x24] ss:$16 sps:$4 sm:$0xff]  }
  0x1e   : > { %576 = vmatprep.subr.bf16.mxu0 %v1525_v4  ;;  %v1767_v11 = vshrl.u32 %v430_v5, 7  ;;  %1523 = vset.pattern.permute.xlu0 %v1631_v7  ;;  %v1533_v13 = vld [vmem:[%s1962_s1 + $0x2c] ss:$16 sps:$4 sm:$0xff]   ;;  %v1535_v14 = vld [vmem:[%s1962_s1 + $0x20] ss:$16 sps:$4 sm:$0xff]   ;;  %vm572_vm6 = vcmask 523264  }
  0x1f   : > { %619 = vmatprep.subr.bf16.mxu1 %v1527_v6  ;;  %1524 = vset.pattern.permute.xlu1 %v1631_v7  ;;  %v1536_v17 = vld [vmem:[%s1962_s1 + $0x28] ss:$16 sps:$4 sm:$0xff]   ;;  %v1537_v18 = vld [vmem:[%s1962_s1 + $0x44] ss:$16 sps:$4 sm:$0xff]   ;;  %v1539_v20 = vld [vmem:[%s1962_s1 + $0x4c] ss:$16 sps:$4 sm:$0xff]  }
  0x20   : > { %577 = vmatpush1.bf16.msra.mxu0 %v1529_v9  ;;  %620 = vmatpush1.bf16.msra.mxu1 %v1530_v10  ;;  %v432_v15 = vadd.s32 8, %v1767_v11  ;;  %v434_v16 = vadd.s32 %v1758_v8, %v1767_v11  ;;  %v1541_v21 = vld [vmem:[%s1962_s1 + $0x40] ss:$16 sps:$4 sm:$0xff]   ;;  %v1542_v22 = vld [vmem:[%s1962_s1 + $0x48] ss:$16 sps:$4 sm:$0xff]   ;;  %v1912_v2 = vsub.s32 0, %v1767_v11 }
  0x21   : > { %578 = vmatprep.subr.bf16.mxu0 %v1531_v12  ;;  %621 = vmatprep.subr.bf16.mxu1 %v1533_v13  ;;  %v1543_v23 = vld [vmem:[%s1962_s1 + $0x64] ss:$16 sps:$4 sm:$0xff]   ;;  %v1545_v24 = vld [vmem:[%s1962_s1 + $0x6c] ss:$16 sps:$4 sm:$0xff]   ;;  %v1547_v25 = vld [vmem:[%s1962_s1 + $0x60] ss:$16 sps:$4 sm:$0xff]  }
  0x22   : > { %v435_v19 = vadd.s32 %v1758_v8, %v432_v15  ;;  %vm439_vm2 = vcmp.lt.s32.totalorder %v434_v16, 40  ;;  %v1548_v26 = vld [vmem:[%s1962_s1 + $0x68] ss:$16 sps:$4 sm:$0xff]   ;;  %v436_v27 = vld [vmem:[%s1743_s20] sm:$0xff]  ;;  %v1557_v42 = vld [vmem:[%s1964_s3 + $0xd0] sm:$0xff]   ;;  %v482_v3 = vsub.s32 2, %v1767_v11 }
  0x23   : > { %v437_v28 = vld [vmem:[%s1743_s20 + $0x8] sm:$0xff]  ;;  %vm445_vm4 = vmpackc.low %vm439_vm2, %vm439_vm2  ;;  %v1549_v30 = vld [vmem:[%s1964_s3 + $0xc0] sm:$0xff]   ;;  %v478_v6 = vsub.s32 1, %v1767_v11  ;;  %v486_v9 = vsub.s32 3, %v1767_v11  ;;  %vm1633_vm8 = vmmov 0   ;;  %vm1079_vm10 = vcmask 122880  }
  0x24   : > { %579 = vmatpush1.bf16.msra.mxu0 %v1535_v14  ;;  %622 = vmatpush1.bf16.msra.mxu1 %v1536_v17  ;;  %vm440_vm3 = vcmp.lt.s32.totalorder %v435_v19, 40  ;;  %v447_v29 = vsel %vm445_vm4, 65537, %v1631_v7  ;;  %v438_v31 = vpack.c.bf16 %v437_v28, %v436_v27  ;;  %v1550_v33 = vld [vmem:[%s1964_s3 + $0x40] sm:$0xff]   ;;  %v1553_v37 = vld [vmem:[%s1964_s3 + $0xc8] sm:$0xff]   ;;  %v1558_v43 = vld [vmem:[%s1964_s3 + $0x50] sm:$0xff]   ;;  %vm1105_vm11 = vcmask 0  }
  0x25   : > { %580 = vmatprep.subr.bf16.mxu0 %v1537_v18  ;;  %623 = vmatprep.subr.bf16.mxu1 %v1539_v20  ;;  %vm446_vm5 = vmpackc.low %vm440_vm3, %vm440_vm3  ;;  %v1551_v35 = vld [vmem:[%s1964_s3 + $0x80] sm:$0xff]   ;;  %v1554_v39 = vld [vmem:[%s1964_s3 + $0x48] sm:$0xff]   ;;  %vm1119_vm12 = vcmask 130048   ;;  %vm1237_vm13 = vcmp.lt.s32.totalorder %v430_v5, 512 }
  0x26   : > { %v448_v32 = vsel %vm446_vm5, 65537, %v1631_v7  ;;  %v1552_v36 = vld [vmem:[%s1964_s3] sm:$0xff]   ;;  %v1555_v40 = vld [vmem:[%s1964_s3 + $0x88] sm:$0xff]   ;;  %v1559_v44 = vld [vmem:[%s1964_s3 + $0x90] sm:$0xff]  }
  0x27   : > { %v1369_v34 = vcombine.low %v447_v29, %v448_v32  ;;  %v1556_v41 = vld [vmem:[%s1964_s3 + $0x8] sm:$0xff]   ;;  %v1560_v45 = vld [vmem:[%s1964_s3 + $0x10] sm:$0xff]   ;;  %v1561_v46 = vld [vmem:[%s1964_s3 + $0xd8] sm:$0xff]  }
  0x28   : > { %581 = vmatpush1.bf16.msra.mxu0 %v1541_v21  ;;  %624 = vmatpush1.bf16.msra.mxu1 %v1542_v22  ;;  %v1562_v47 = vld [vmem:[%s1964_s3 + $0x58] sm:$0xff]   ;;  %v1565_v50 = vld [vmem:[%s1964_s3 + $0xe0] sm:$0xff]   ;;  %v1569_v54 = vld [vmem:[%s1964_s3 + $0xe8] sm:$0xff]  }
  0x29   : > { %582 = vmatprep.subr.bf16.mxu0 %v1543_v23  ;;  %625 = vmatprep.subr.bf16.mxu1 %v1545_v24  ;;  %vm452_vm7 = vcmp.ne.s16.totalorder %v1369_v34, 0  ;;  %v1563_v48 = vld [vmem:[%s1964_s3 + $0x98] sm:$0xff]   ;;  %v1566_v51 = vld [vmem:[%s1964_s3 + $0x60] sm:$0xff]   ;;  %v1570_v55 = vld [vmem:[%s1964_s3 + $0x68] sm:$0xff]  }
  0x2a   : > { %v453_v38 = vsel %vm452_vm7, %v438_v31, 0  ;;  %v1564_v49 = vld [vmem:[%s1964_s3 + $0x18] sm:$0xff]   ;;  %v1567_v52 = vld [vmem:[%s1964_s3 + $0xa0] sm:$0xff]   ;;  %v1571_v56 = vld [vmem:[%s1964_s3 + $0xa8] sm:$0xff]  }
  0x2b   : > { %v1568_v53 = vld [vmem:[%s1964_s3 + $0x20] sm:$0xff]   ;;  %v1572_v57 = vld [vmem:[%s1964_s3 + $0x28] sm:$0xff]   ;;  %v1573_v58 = vld [vmem:[%s1964_s3 + $0xf0] sm:$0xff]  }
  0x2c   : > { %583 = vmatpush1.bf16.msra.mxu0 %v1547_v25  ;;  %626 = vmatpush1.bf16.msra.mxu1 %v1548_v26  ;;  %v1574_v59 = vld [vmem:[%s1964_s3 + $0x70] sm:$0xff]   ;;  %v1577_v62 = vld [vmem:[%s1964_s3 + $0xf8] sm:$0xff]   ;;  %v470_v4 = vld [vmem:[%s1963_s2] sm:$0xf] }
  0x2d   : > { %1447 = vmatprep.subr.bf16.mxu1 %v1549_v30  ;;  %1425 = vmatprep.subr.bf16.mxu0 %v1550_v33  ;;  %v1575_v60 = vld [vmem:[%s1964_s3 + $0xb0] sm:$0xff]   ;;  %v1578_v63 = vld [vmem:[%s1964_s3 + $0x78] sm:$0xff]   ;;  %v475_v10 = vrot.slane %v470_v4, %v1912_v2  ;;  %v483_v12 = vrot.slane %v470_v4, %v482_v3  ;;  %v479_v13 = vrot.slane %v470_v4, %v478_v6  ;;  %v1074_v3 = vand.u32 127, %v430_v5 }
  0x2e   : > { %v1576_v61 = vld [vmem:[%s1964_s3 + $0x30] sm:$0xff]   ;;  %v1579_v0 = vld [vmem:[%s1964_s3 + $0xb8] sm:$0xff]   ;;  %v487_v14 = vrot.slane %v470_v4, %v486_v9 }
  0x2f   : > { %1386 = vmatmul.mubr.msk.bf16.vlgmr.msra.gmra.mrb[0].mxu0 %vm572_vm6, %v453_v38  ;;  %1387 = vmatmul.mubr.msk.bf16.vlgmr.msra.gmra.mrb[0].mxu1 %vm572_vm6, %v453_v38  ;;  %v1580_v1 = vld [vmem:[%s1964_s3 + $0x38] sm:$0xff]   ;;  %v1075_v6 = vadd.s32 %v1074_v3, %v1758_v8 }
  0x30   : > { %1448 = vmatpush3.bf16.msra.mxu1 %v1551_v35  ;;  %1426 = vmatpush3.bf16.msra.mxu0 %v1552_v36 }
  0x31   : > { %1449 = vmatprep.subr.bf16.mxu1 %v1553_v37  ;;  %1427 = vmatprep.subr.bf16.mxu0 %v1554_v39  ;;  %vm1076_vm9 = vcmp.lt.s32.totalorder %v1075_v6, 40 }
  0x34   : > { %1450 = vmatpush3.bf16.msra.mxu1 %v1555_v40  ;;  %1428 = vmatpush3.bf16.msra.mxu0 %v1556_v41 }
  0x35   : > { %1451 = vmatprep.subr.bf16.mxu1 %v1557_v42  ;;  %1429 = vmatprep.subr.bf16.mxu0 %v1558_v43  ;;  %v1632_v43 = vmov 0.0  }
  0x38   : > { %1452 = vmatpush3.bf16.msra.mxu1 %v1559_v44  ;;  %1430 = vmatpush3.bf16.msra.mxu0 %v1560_v45  ;;  %v1023_v44 = vld [vmem:[#allocation2] sm:$0x1] }
  0x39   : > { %1453 = vmatprep.subr.bf16.mxu1 %v1561_v46  ;;  %1431 = vmatprep.subr.bf16.mxu0 %v1562_v47  ;;  %v1388_v47 = vld [vmem:[%s1965_s4] ss:$0 sm:$0xff] }
  0x3a   : > { %1026 = vperm.xlu0 %1523, %v1023_v44  }
  0x3c   : > { %1454 = vmatpush3.bf16.msra.mxu1 %v1563_v48  ;;  %1432 = vmatpush3.bf16.msra.mxu0 %v1564_v49 }
  0x3d   : > { %1455 = vmatprep.subr.bf16.mxu1 %v1565_v50  ;;  %1433 = vmatprep.subr.bf16.mxu0 %v1566_v51 }
  0x40   : > { %1456 = vmatpush3.bf16.msra.mxu1 %v1567_v52  ;;  %1434 = vmatpush3.bf16.msra.mxu0 %v1568_v53 }
  0x41   : > { %1457 = vmatprep.subr.bf16.mxu1 %v1569_v54  ;;  %1435 = vmatprep.subr.bf16.mxu0 %v1570_v55 }
  0x44   : > { %1458 = vmatpush3.bf16.msra.mxu1 %v1571_v56  ;;  %1436 = vmatpush3.bf16.msra.mxu0 %v1572_v57 }
  0x45   : > { %1459 = vmatprep.subr.bf16.mxu1 %v1573_v58  ;;  %1437 = vmatprep.subr.bf16.mxu0 %v1574_v59 }
  0x48   : > { %1460 = vmatpush3.bf16.msra.mxu1 %v1575_v60  ;;  %1438 = vmatpush3.bf16.msra.mxu0 %v1576_v61 }
  0x49   : > { %1461 = vmatprep.subr.bf16.mxu1 %v1577_v62  ;;  %1439 = vmatprep.subr.bf16.mxu0 %v1578_v63 }
  0x4c   : > { %1462 = vmatpush3.bf16.msra.mxu1 %v1579_v0  ;;  %1440 = vmatpush3.bf16.msra.mxu0 %v1580_v1  ;;  %v1021_v1 = vld [vmem:[%s1966_s5] sm:$0x1] }
  0x4d   : > { %1471 = vmatprep.subr.bf16.mxu0 %v1632_v43 }
  0xb9   : > { %v1027_v4 = vpop.permute.xlu0 %1026 }
  0xba   : > { %v1032_v9 = vrot.slane %v1027_v4, %v1912_v2 }
 0x102   : > { %v610_v15 = vpop.f32.mrb[0].mxu0  ;;  %v653_v16 = vpop.f32.mrb[0].mxu1 }
 0x103   : > { %v611_v17 = vadd.f32 %v610_v15, %v475_v10  ;;  %v654_v18 = vadd.f32 %v653_v16, %v483_v12  ;;  %v612_v19 = vpop.f32.mrb[1].mxu0  ;;  %v655_v20 = vpop.f32.mrb[1].mxu1 }
 0x104   : > { %v613_v21 = vadd.f32 %v612_v19, %v479_v13  ;;  %v656_v22 = vadd.f32 %v655_v20, %v487_v14  ;;  %v614_v23 = vpop.f32.mrb[2].mxu0  ;;  %v657_v24 = vpop.f32.mrb[2].mxu1 }
 0x105   : > { %v664_v25 = vmax.f32 %v654_v18, 0.0  ;;  %v615_v26 = vadd.f32 %v614_v23, %v475_v10  ;;  %v658_v27 = vadd.f32 %v657_v24, %v483_v12  ;;  %v616_v28 = vpop.f32.mrb[3].mxu0  ;;  %v659_v29 = vpop.f32.mrb[3].mxu1  ;;  %v662_v33 = vmax.f32 %v611_v17, 0.0 }
 0x106   : > { %v665_v30 = vmax.f32 %v656_v22, 0.0  ;;  %v617_v31 = vadd.f32 %v616_v28, %v479_v13  ;;  %v660_v32 = vadd.f32 %v659_v29, %v487_v14  ;;  %v663_v36 = vmax.f32 %v613_v21, 0.0  ;;  %v1099_v29 = vld [vmem:[%s1733_s25] sm:$0x1] }
 0x107   : > { %v666_v34 = vmax.f32 %v615_v26, 0.0  ;;  %v668_v35 = vmax.f32 %v658_v27, 0.0 }
 0x108   : > { %v667_v37 = vmax.f32 %v617_v31, 0.0  ;;  %v669_v38 = vmax.f32 %v660_v32, 0.0 }
 0x109   : > { %v670_v39 = vpack.c.bf16 %v666_v34, %v662_v33  ;;  %v672_v40 = vpack.c.bf16 %v668_v35, %v664_v25  ;;  %v1634_v33 = vmov 1966171168  }
 0x10a   : > { %v671_v41 = vpack.c.bf16 %v667_v37, %v663_v36  ;;  %v673_v42 = vpack.c.bf16 %v669_v38, %v665_v30  ;;  %v1212_v34 = vunpack.c.l.s4 %v1634_v33 }
 0x10c   : > { %969 = vmatprep.mubr.bf16.mxu0 %v671_v41  ;;  %1010 = vmatprep.mubr.bf16.mxu1 %v673_v42  ;;  %v1213_v35 = vunpack.c.0.s8 %v1212_v34 }
 0x10d   : > { %1123 = vmatprep.subr.bf16.mxu1 %v671_v41  ;;  %970 = vmatmul.mubr.bf16.vlgmr.msra.gmra.mrb[4].mxu0 %v670_v39 }
 0x10e   : > { %1011 = vmatmul.mubr.bf16.vlgmr.msra.gmra.mrb[4].mxu1 %v672_v40  ;;  %1473 = vmatprep.mubr.msk.bf16.mxu0 %vm1633_vm8, %v1632_v43 }
 0x10f   : > { %1124 = vmatpush1.bf16.msra.mxu1 %v670_v39  ;;  %1155 = vmatprep.mubr.bf16.mxu1 %v1631_v7  ;;  %v1216_v39 = vsub.s32 %v1213_v35, %v1767_v11 }
 0x1e0   : > { %v1441_v45 = vpop.f32.mrb[4].mxu0 }
 0x1e1   : > { %v1463_v46 = vpop.f32.mrb[4].mxu1  ;;  %v1442_v48 = vpop.f32.mrb[5].mxu0 }
 0x1e2   : > { %v1443_v49 = vadd.f32 %v1442_v48, %v1441_v45  ;;  %v1464_v50 = vpop.f32.mrb[5].mxu1  ;;  %v1444_v51 = vpop.f32.mrb[6].mxu0 }
 0x1e3   : > { %v1465_v52 = vadd.f32 %v1464_v50, %v1463_v46  ;;  %v1466_v53 = vpop.f32.mrb[6].mxu1  ;;  %v1445_v54 = vpop.f32.mrb[7].mxu0 }
 0x1e4   : > { %v972_v55 = vadd.f32 %v1443_v49, %v1388_v47  ;;  %v1446_v56 = vadd.f32 %v1445_v54, %v1444_v51  ;;  %v1467_v57 = vpop.f32.mrb[7].mxu1  ;;  %v1107_v51 = vld [vmem:[%s1738_s30] sm:$0xf] }
 0x1e5   : > { %v1468_v58 = vadd.f32 %v1467_v57, %v1466_v53 }
 0x1e6   : > { %v1013_v59 = vadd.f32 %v1465_v52, %v972_v55  ;;  %v975_v60 = vadd.f32 %v1446_v56, %v1388_v47 }
 0x1e8   : > { %v1016_v61 = vadd.f32 %v1468_v58, %v975_v60  ;;  %1581 = vtanh.f32 %v1013_v59 }
 0x1ea   : > { %1583 = vtanh.f32 %v1016_v61 }
 0x1f2   : > { %v1582_v62 = vpop.eup %1581 }
 0x1f4   : > { %v1584_v63 = vpop.eup %1583 }
 0x1f5   : > { %v1022_v0 = vpack.c.bf16 %v1584_v63, %v1582_v62 }
 0x1f7   : > { %1472 = vmatpush3.bf16.xpose.msra.mxu0 %v1022_v0 }
 0x1f8   : > { %1164 = vmatprep.subr.bf16.mxu0 %v673_v42 }
 0x1fe   : > { %1474 = vmatmul.mubr.bf16.vlgmr.msra.gmra.mrb[8].mxu0 %v1021_v1 }
 0x1ff   : > { %1165 = vmatpush1.bf16.msra.mxu0 %v672_v40  ;;  %1196 = vmatprep.mubr.bf16.mxu0 %v1631_v7  ;;  %v1078_v7 = vld [vmem:[%s1728_s22] sm:$0x1] }
 0x2d1   : > { %v1067_v10 = vpop.f32.mrb[8].mxu0 }
 0x2d2   : > { %v1068_v12 = vadd.f32 %v1067_v10, %v1032_v9  ;;  %v1475_v13 = vpop.f32.mrb[9].mxu0 }
 0x2d3   : > { %v1070_v14 = vpop.f32.mrb[10].mxu0 }
 0x2d4   : > { %v1476_v15 = vpop.f32.mrb[11].mxu0  ;;  %v1077_v16 = vsel %vm1076_vm9, %v1068_v12, -1e+30 }
 0x2d5   : > { %v1080_v17 = vsel %vm1079_vm10, %v1077_v16, -inf }
 0x2d6   : > { %1081 = vmax.xlane.f32.xlu0 %v1080_v17 }
 0x363   : > { %v1082_v18 = vpop.xlane.xlu0 %1081 }
 0x364   : > { %v1083_v19 = vmax.f32 %v1078_v7, %v1082_v18 }
 0x366   : > { %v1084_v20 = vsub.f32 %v1078_v7, %v1083_v19  ;;  %1240 = vst.msk [vmem:[%s1728_s22] sm:$0x1] %vm1105_vm11, %v1083_v19  ;;  %1089 = vperm.xlu1 %1524, %v1083_v19  }
 0x368   : > { %v1085_v8 = vmul.f32 1.442695, %v1084_v20 }
 0x36a   : > { %1585 = vpow2.f32 %v1085_v8 }
 0x374   : > { %v1586_v21 = vpop.eup %1585 }
 0x375   : > { %1110 = vperm.xlu0 %1523, %v1586_v21   ;;  %v1100_v30 = vmul.f32 %v1586_v21, %v1099_v29 }
 0x3e5   : > { %v1090_v22 = vpop.permute.xlu1 %1089 }
 0x3e6   : > { %v1095_v23 = vrot.slane %v1090_v22, %v1912_v2 }
 0x3e8   : > { %v1096_v24 = vsub.f32 %v1077_v16, %v1095_v23 }
 0x3ea   : > { %v1097_v25 = vmul.f32 1.442695, %v1096_v24 }
 0x3ec   : > { %1587 = vpow2.f32 %v1097_v25 }
 0x3f4   : > { %v1111_v36 = vpop.permute.xlu0 %1110 }
 0x3f5   : > { %v1116_v48 = vrot.slane %v1111_v36, %v1912_v2 }
 0x3f6   : > { %v1588_v26 = vpop.eup %1587 }
 0x3f7   : > { %v1101_v27 = vsel %vm1079_vm10, %v1588_v26, 0.0  ;;  %v1118_v28 = vpack.c.bf16 %v1588_v26, %v1588_v26  ;;  %v1117_v53 = vmul.f32 %v1116_v48, %v1107_v51 }
 0x3f8   : > { %1102 = vadd.xlane.f32.xlu1 %v1101_v27 }
 0x3f9   : > { %1421 = vmatmul.mubr.msk.bf16.vlgmr.msra.gmra.mrb[8].mxu1 %vm1119_vm12, %v1118_v28  ;;  %1422 = vmatmul.mubr.msk.bf16.vlgmr.msra.gmra.mrb[12].mxu0 %vm1119_vm12, %v1118_v28 }
 0x485   : > { %v1103_v31 = vpop.xlane.xlu1 %1102 }
 0x486   : > { %v1104_v32 = vadd.f32 %v1103_v31, %v1100_v30 }
 0x488   : > { %1106 = vst.msk [vmem:[%s1733_s25] sm:$0x1] %vm1105_vm11, %v1104_v32 }
 0x4cc   : > { %v1157_v37 = vpop.f32.mrb[8].mxu1  ;;  %v1198_v38 = vpop.f32.mrb[12].mxu0 }
 0x4cd   : > { %v1159_v40 = vpop.f32.mrb[9].mxu1  ;;  %v1200_v41 = vpop.f32.mrb[13].mxu0 }
 0x4ce   : > { %v1209_v42 = vcombine.low %v1157_v37, %v1159_v40  ;;  %v1210_v43 = vcombine.low %v1198_v38, %v1200_v41  ;;  %v1161_v44 = vpop.f32.mrb[10].mxu1  ;;  %v1202_v45 = vpop.f32.mrb[14].mxu0 }
 0x4cf   : > { %v1162_v46 = vpop.f32.mrb[11].mxu1  ;;  %v1203_v47 = vpop.f32.mrb[15].mxu0 }
 0x4d0   : > { %v1217_v49 = vrot.slane %v1209_v42, %v1216_v39  ;;  %v1224_v50 = vrot.slane %v1210_v43, %v1216_v39 }
 0x4d2   : > { %v1225_v52 = vcombine.low %v1217_v49, %v1224_v50 }
 0x4d4   : > { %v1232_v54 = vrot.slane %v1225_v52, %v1216_v39 }
 0x4d6   : > { %v1234_v11 = vadd.f32 %v1232_v54, %v1117_v53 }
 0x4d8   : > { %1239 = vst.msk [vmem:[%s1738_s30] sm:$0xf] %vm1237_vm13, %v1234_v11 }
 0x4d9 PF: > { %s22_s15 = sadd.s32 1, %s1627_s15   ;;  %s1972_s22 = sld [smem:[#allocation3_spill]] }
 0x4da   : > { %p19_p9 = scmp.ge.s32.totalorder %s22_s15, 6   ;;  %s1973_s11 = smov %s1619_s13 }
 0x4db   : > { %s1974_s12 = smov %s1623_s14  ;;  %s1975_s13 = smov %s1978_s6 }
 0x4dc   :  { %21 = sbr.rel (!%p19_p9) target bundleno = 3 (0x3), region = 106 }
 0x4df   : > { %s1976_s14 = smov %s1972_s22 }

</bundles_post_ra>
